<compile_context>
chip_gen: v6e
topology: v6e:2x2x1
jax: 0.10.0
libtpu: 0.0.40
codegen_flags: <defaults>
</compile_context>

<pallas_src>
import jax
import jax.numpy as jnp
from jax.experimental import pallas as pl
from jax.experimental.pallas import tpu as pltpu

SELU_ALPHA = 1.6732632423543772848170429916717
SELU_SCALE = 1.0507009873554804934193349852946


def _selu(x):
    # exp(x)-1 instead of expm1: guaranteed Mosaic lowering; the precision loss
    # near x==0 is an absolute error < ~1.2e-7 in f32, negligible for this net.
    return SELU_SCALE * jnp.where(x > 0.0, x, SELU_ALPHA * (jnp.exp(x) - 1.0))


def _mlp_kernel(x_ref,
                w1_ref, b1_ref,
                w2_ref, b2_ref,
                w3_ref, b3_ref,
                w4_ref, b4_ref,
                w5t_ref, b5_ref,
                o_ref):
    tb = x_ref.shape[0]
    half = tb // 2

    def stage(aa, ab, w_ref, b_ref):
        # Two independent half-tile chains: the LLO scheduler overlaps one
        # half's SELU (VPU/EUP) with the other half's matmul (MXU).
        w = w_ref[...]
        b = b_ref[...]
        ha = jnp.dot(aa, w, preferred_element_type=jnp.float32)
        hb = jnp.dot(ab, w, preferred_element_type=jnp.float32)
        return _selu(ha + b), _selu(hb + b)

    # bf16 cast of x happens here (in VMEM), not in the wrapper.
    aa = x_ref[0:half, :].astype(jnp.bfloat16)
    ab = x_ref[half:tb, :].astype(jnp.bfloat16)

    # Layers 1-3: carry inter-layer activations as bf16 (halves spill bytes).
    # AlphaDropout(0.2/0.4/0.4) == identity in eval mode.
    for w_ref, b_ref in ((w1_ref, b1_ref), (w2_ref, b2_ref), (w3_ref, b3_ref)):
        ha, hb = stage(aa, ab, w_ref, b_ref)
        aa, ab = ha.astype(jnp.bfloat16), hb.astype(jnp.bfloat16)

    # Layer 4: keep the 64-wide activation in f32 for the VPU tail.
    ha, hb = stage(aa, ab, w4_ref, b4_ref)          # (half, 64) f32 each

    # Final 64 -> 2 layer on the VPU/XLU (broadcast-multiply + lane reduction),
    # stored column-by-column: no MXU pass, no lane concat.
    w5t = w5t_ref[...]                              # (2, 64) f32, pre-transposed
    b5 = b5_ref[...]                                # (1, 2)  f32
    o_ref[0:half, 0:1] = (jnp.sum(ha * w5t[0:1, :], axis=-1, keepdims=True)
                          + b5[:, 0:1]).astype(o_ref.dtype)
    o_ref[0:half, 1:2] = (jnp.sum(ha * w5t[1:2, :], axis=-1, keepdims=True)
                          + b5[:, 1:2]).astype(o_ref.dtype)
    o_ref[half:tb, 0:1] = (jnp.sum(hb * w5t[0:1, :], axis=-1, keepdims=True)
                           + b5[:, 0:1]).astype(o_ref.dtype)
    o_ref[half:tb, 1:2] = (jnp.sum(hb * w5t[1:2, :], axis=-1, keepdims=True)
                           + b5[:, 1:2]).astype(o_ref.dtype)


def _round_up(n, m):
    return ((n + m - 1) // m) * m


def _batch_map(i):
    return (i, 0)


def _const_map(i):
    return (0, 0)


def alzh_speech_nn_forward(x, params, tile_b=2048):
    """x: (B, input_dim) float32. params: list of (W, b) for the 5 Linear layers."""
    B, in_dim = x.shape
    (w1, b1), (w2, b2), (w3, b3), (w4, b4), (w5, b5) = params
    out_dim = w5.shape[1]

    # Batch tile: multiple of 32 (two 16-row bf16 half-tiles), large by default
    # to amortize per-grid-step overhead, capped at the rounded batch size.
    tb = max(32, (min(tile_b, _round_up(B, 32)) // 32) * 32)
    # v7x: keep >= 2 grid steps so the "parallel" batch axis is sharded across
    # both TensorCores (harmless on single-TC v5e/v6e).
    if pl.cdiv(B, tb) == 1 and B > 32:
        tb = _round_up(pl.cdiv(B, 2), 32)
    grid = (pl.cdiv(B, tb),)

    # No wrapper-side cast/pad passes over x: the tail is a masked partial last
    # tile; only a tiny pad when the whole batch is smaller than one tile.
    x_in = x if x.dtype == jnp.float32 else x.astype(jnp.float32)
    bp = B
    if B < tb:
        bp = tb
        x_in = jnp.pad(x_in, ((0, tb - B), (0, 0)))

    # Weights as bf16 MXU operands (~120 KB total, cast once); biases and the
    # 64->2 tail stay in f32.
    w1_bf = w1.astype(jnp.bfloat16)
    w2_bf = w2.astype(jnp.bfloat16)
    w3_bf = w3.astype(jnp.bfloat16)
    w4_bf = w4.astype(jnp.bfloat16)
    w5_t = jnp.asarray(w5, jnp.float32).T            # (2, 64)
    b1r = b1.reshape(1, -1).astype(jnp.float32)
    b2r = b2.reshape(1, -1).astype(jnp.float32)
    b3r = b3.reshape(1, -1).astype(jnp.float32)
    b4r = b4.reshape(1, -1).astype(jnp.float32)
    b5r = b5.reshape(1, -1).astype(jnp.float32)

    # Weights/biases use constant index_maps -> DMA'd once, VMEM-resident.
    # (pipeline_mode=pl.Buffered(1) on these would shave ~120 KB of redundant
    #  double buffers; skipped as pure hygiene per the review.)
    in_specs = [
        pl.BlockSpec((tb, in_dim), _batch_map),       # x: pipelined batch tiles
        pl.BlockSpec(w1_bf.shape, _const_map),
        pl.BlockSpec(b1r.shape, _const_map),
        pl.BlockSpec(w2_bf.shape, _const_map),
        pl.BlockSpec(b2r.shape, _const_map),
        pl.BlockSpec(w3_bf.shape, _const_map),
        pl.BlockSpec(b3r.shape, _const_map),
        pl.BlockSpec(w4_bf.shape, _const_map),
        pl.BlockSpec(b4r.shape, _const_map),
        pl.BlockSpec(w5_t.shape, _const_map),
        pl.BlockSpec(b5r.shape, _const_map),
    ]
    out_specs = pl.BlockSpec((tb, out_dim), _batch_map)

    out = pl.pallas_call(
        _mlp_kernel,
        out_shape=jax.ShapeDtypeStruct((bp, out_dim), jnp.float32),
        grid=grid,
        in_specs=in_specs,
        out_specs=out_specs,
        compiler_params=pltpu.CompilerParams(
            dimension_semantics=("parallel",)),
    )(x_in, w1_bf, b1r, w2_bf, b2r, w3_bf, b3r, w4_bf, b4r, w5_t, b5r)

    return out[:B]


def init_params(key, input_dim=45):
    """Deterministic init mimicking torch.nn.Linear default U(-1/sqrt(fan_in), +)."""
    dims = [input_dim, 64, 128, 256, 64, 2]
    params = []
    for i in range(len(dims) - 1):
        fan_in, fan_out = dims[i], dims[i + 1]
        key, kw, kb = jax.random.split(key, 3)
        bound = 1.0 / (fan_in ** 0.5)
        w = jax.random.uniform(kw, (fan_in, fan_out), jnp.float32, -bound, bound)
        b = jax.random.uniform(kb, (fan_out,), jnp.float32, -bound, bound)
        params.append((w, b))
    return params


def reference_forward(x, params):
    """Pure-JAX reference mirroring the kernel's mixed precision (bf16 MXU
    operands / inter-layer activations, f32 accumulation + SELU, f32 VPU tail)."""
    a = jnp.asarray(x, jnp.float32).astype(jnp.bfloat16)
    h = None
    for (w, b) in params[:-1]:
        h = jnp.dot(a, w.astype(jnp.bfloat16),
                    preferred_element_type=jnp.float32) + b
        h = _selu(h)
        a = h.astype(jnp.bfloat16)
    w5, b5 = params[-1]
    return jnp.sum(h[:, :, None] * jnp.asarray(w5, jnp.float32)[None, :, :],
                   axis=1) + b5


if __name__ == "__main__":
    key = jax.random.PRNGKey(0)
    kx, kp = jax.random.split(key)

    B, INPUT_DIM = 40, 45   # small demo: 2 grid steps + masked partial last tile
    x = jax.random.normal(kx, (B, INPUT_DIM), jnp.float32)
    params = init_params(kp, input_dim=INPUT_DIM)

    out = alzh_speech_nn_forward(x, params)
    out = jax.block_until_ready(out)

    ref = reference_forward(x, params)
    assert out.shape == (B, 2), out.shape
    max_err = float(jnp.max(jnp.abs(out - ref)))
    assert jnp.allclose(out, ref, atol=5e-3, rtol=5e-3), f"max abs err {max_err}"

    print("KERNEL_OK")
</pallas_src>

<mosaic_0001>
module attributes {stable_mosaic.version = 11 : i64} {
  func.func @_mlp_kernel(%arg0: i32, %arg1: memref<32x45xf32, #tpu.memory_space<vmem>>, %arg2: memref<45x64xbf16, #tpu.memory_space<vmem>>, %arg3: memref<1x64xf32, #tpu.memory_space<vmem>>, %arg4: memref<64x128xbf16, #tpu.memory_space<vmem>>, %arg5: memref<1x128xf32, #tpu.memory_space<vmem>>, %arg6: memref<128x256xbf16, #tpu.memory_space<vmem>>, %arg7: memref<1x256xf32, #tpu.memory_space<vmem>>, %arg8: memref<256x64xbf16, #tpu.memory_space<vmem>>, %arg9: memref<1x64xf32, #tpu.memory_space<vmem>>, %arg10: memref<2x64xf32, #tpu.memory_space<vmem>>, %arg11: memref<1x2xf32, #tpu.memory_space<vmem>>, %arg12: memref<32x2xf32, #tpu.memory_space<vmem>>) attributes {dimension_semantics = [#tpu.dimension_semantics<parallel>], iteration_bounds = array<i64: 2>, scalar_prefetch = 0 : i64, scratch_operands = 0 : i64, tpu.core_type = #tpu.core_type<tc>, window_params = [{transform_indices = @transform_0, window_bounds = array<i64: 32, 45>}, {pipeline_mode = #tpu.pipeline_mode<synchronous>, transform_indices = @transform_1, window_bounds = array<i64: 45, 64>}, {pipeline_mode = #tpu.pipeline_mode<synchronous>, transform_indices = @transform_2, window_bounds = array<i64: 1, 64>}, {pipeline_mode = #tpu.pipeline_mode<synchronous>, transform_indices = @transform_3, window_bounds = array<i64: 64, 128>}, {pipeline_mode = #tpu.pipeline_mode<synchronous>, transform_indices = @transform_4, window_bounds = array<i64: 1, 128>}, {pipeline_mode = #tpu.pipeline_mode<synchronous>, transform_indices = @transform_5, window_bounds = array<i64: 128, 256>}, {pipeline_mode = #tpu.pipeline_mode<synchronous>, transform_indices = @transform_6, window_bounds = array<i64: 1, 256>}, {pipeline_mode = #tpu.pipeline_mode<synchronous>, transform_indices = @transform_7, window_bounds = array<i64: 256, 64>}, {pipeline_mode = #tpu.pipeline_mode<synchronous>, transform_indices = @transform_8, window_bounds = array<i64: 1, 64>}, {pipeline_mode = #tpu.pipeline_mode<synchronous>, transform_indices = @transform_9, window_bounds = array<i64: 2, 64>}, {pipeline_mode = #tpu.pipeline_mode<synchronous>, transform_indices = @transform_10, window_bounds = array<i64: 1, 2>}, {transform_indices = @transform_11, window_bounds = array<i64: 32, 2>}]} {
    %c0 = arith.constant 0 : index
    %c0_0 = arith.constant 0 : index
    %0 = vector.load %arg1[%c0, %c0_0] : memref<32x45xf32, #tpu.memory_space<vmem>>, vector<16x45xf32>
    %1 = arith.truncf %0 : vector<16x45xf32> to vector<16x45xbf16>
    %c16 = arith.constant 16 : index
    %c0_1 = arith.constant 0 : index
    %2 = vector.load %arg1[%c16, %c0_1] : memref<32x45xf32, #tpu.memory_space<vmem>>, vector<16x45xf32>
    %3 = arith.truncf %2 : vector<16x45xf32> to vector<16x45xbf16>
    %c0_2 = arith.constant 0 : index
    %c0_3 = arith.constant 0 : index
    %4 = vector.load %arg2[%c0_2, %c0_3] : memref<45x64xbf16, #tpu.memory_space<vmem>>, vector<45x64xbf16>
    %c0_4 = arith.constant 0 : index
    %c0_5 = arith.constant 0 : index
    %5 = vector.load %arg3[%c0_4, %c0_5] : memref<1x64xf32, #tpu.memory_space<vmem>>, vector<1x64xf32>
    %cst = arith.constant dense<0.000000e+00> : vector<16x64xf32>
    %6 = tpu.matmul %1, %4, %cst {dimension_numbers = #tpu.dot_dimension_numbers<[1], [0], [0], [1], [0, 0, 1, 1], [], []>} : vector<16x45xbf16>, vector<45x64xbf16>, vector<16x64xf32> -> vector<16x64xf32>
    %cst_6 = arith.constant dense<0.000000e+00> : vector<16x64xf32>
    %7 = tpu.matmul %3, %4, %cst_6 {dimension_numbers = #tpu.dot_dimension_numbers<[1], [0], [0], [1], [0, 0, 1, 1], [], []>} : vector<16x45xbf16>, vector<45x64xbf16>, vector<16x64xf32> -> vector<16x64xf32>
    %8 = vector.broadcast %5 : vector<1x64xf32> to vector<16x64xf32>
    %9 = arith.addf %6, %8 : vector<16x64xf32>
    %cst_7 = arith.constant 0.000000e+00 : f32
    %10 = vector.broadcast %cst_7 : f32 to vector<16x64xf32>
    %11 = arith.cmpf ogt, %9, %10 : vector<16x64xf32>
    %12 = math.exp %9 : vector<16x64xf32>
    %cst_8 = arith.constant 1.000000e+00 : f32
    %13 = vector.broadcast %cst_8 : f32 to vector<16x64xf32>
    %14 = arith.subf %12, %13 : vector<16x64xf32>
    %cst_9 = arith.constant 1.67326319 : f32
    %15 = vector.broadcast %cst_9 : f32 to vector<16x64xf32>
    %16 = arith.mulf %15, %14 : vector<16x64xf32>
    %17 = arith.select %11, %9, %16 : vector<16x64xi1>, vector<16x64xf32>
    %cst_10 = arith.constant 1.05070102 : f32
    %18 = vector.broadcast %cst_10 : f32 to vector<16x64xf32>
    %19 = arith.mulf %18, %17 : vector<16x64xf32>
    %20 = vector.broadcast %5 : vector<1x64xf32> to vector<16x64xf32>
    %21 = arith.addf %7, %20 : vector<16x64xf32>
    %cst_11 = arith.constant 0.000000e+00 : f32
    %22 = vector.broadcast %cst_11 : f32 to vector<16x64xf32>
    %23 = arith.cmpf ogt, %21, %22 : vector<16x64xf32>
    %24 = math.exp %21 : vector<16x64xf32>
    %cst_12 = arith.constant 1.000000e+00 : f32
    %25 = vector.broadcast %cst_12 : f32 to vector<16x64xf32>
    %26 = arith.subf %24, %25 : vector<16x64xf32>
    %cst_13 = arith.constant 1.67326319 : f32
    %27 = vector.broadcast %cst_13 : f32 to vector<16x64xf32>
    %28 = arith.mulf %27, %26 : vector<16x64xf32>
    %29 = arith.select %23, %21, %28 : vector<16x64xi1>, vector<16x64xf32>
    %cst_14 = arith.constant 1.05070102 : f32
    %30 = vector.broadcast %cst_14 : f32 to vector<16x64xf32>
    %31 = arith.mulf %30, %29 : vector<16x64xf32>
    %32 = arith.truncf %19 : vector<16x64xf32> to vector<16x64xbf16>
    %33 = arith.truncf %31 : vector<16x64xf32> to vector<16x64xbf16>
    %c0_15 = arith.constant 0 : index
    %c0_16 = arith.constant 0 : index
    %34 = vector.load %arg4[%c0_15, %c0_16] : memref<64x128xbf16, #tpu.memory_space<vmem>>, vector<64x128xbf16>
    %c0_17 = arith.constant 0 : index
    %c0_18 = arith.constant 0 : index
    %35 = vector.load %arg5[%c0_17, %c0_18] : memref<1x128xf32, #tpu.memory_space<vmem>>, vector<1x128xf32>
    %cst_19 = arith.constant dense<0.000000e+00> : vector<16x128xf32>
    %36 = tpu.matmul %32, %34, %cst_19 {dimension_numbers = #tpu.dot_dimension_numbers<[1], [0], [0], [1], [0, 0, 1, 1], [], []>} : vector<16x64xbf16>, vector<64x128xbf16>, vector<16x128xf32> -> vector<16x128xf32>
    %cst_20 = arith.constant dense<0.000000e+00> : vector<16x128xf32>
    %37 = tpu.matmul %33, %34, %cst_20 {dimension_numbers = #tpu.dot_dimension_numbers<[1], [0], [0], [1], [0, 0, 1, 1], [], []>} : vector<16x64xbf16>, vector<64x128xbf16>, vector<16x128xf32> -> vector<16x128xf32>
    %38 = vector.broadcast %35 : vector<1x128xf32> to vector<16x128xf32>
    %39 = arith.addf %36, %38 : vector<16x128xf32>
    %cst_21 = arith.constant 0.000000e+00 : f32
    %40 = vector.broadcast %cst_21 : f32 to vector<16x128xf32>
    %41 = arith.cmpf ogt, %39, %40 : vector<16x128xf32>
    %42 = math.exp %39 : vector<16x128xf32>
    %cst_22 = arith.constant 1.000000e+00 : f32
    %43 = vector.broadcast %cst_22 : f32 to vector<16x128xf32>
    %44 = arith.subf %42, %43 : vector<16x128xf32>
    %cst_23 = arith.constant 1.67326319 : f32
    %45 = vector.broadcast %cst_23 : f32 to vector<16x128xf32>
    %46 = arith.mulf %45, %44 : vector<16x128xf32>
    %47 = arith.select %41, %39, %46 : vector<16x128xi1>, vector<16x128xf32>
    %cst_24 = arith.constant 1.05070102 : f32
    %48 = vector.broadcast %cst_24 : f32 to vector<16x128xf32>
    %49 = arith.mulf %48, %47 : vector<16x128xf32>
    %50 = vector.broadcast %35 : vector<1x128xf32> to vector<16x128xf32>
    %51 = arith.addf %37, %50 : vector<16x128xf32>
    %cst_25 = arith.constant 0.000000e+00 : f32
    %52 = vector.broadcast %cst_25 : f32 to vector<16x128xf32>
    %53 = arith.cmpf ogt, %51, %52 : vector<16x128xf32>
    %54 = math.exp %51 : vector<16x128xf32>
    %cst_26 = arith.constant 1.000000e+00 : f32
    %55 = vector.broadcast %cst_26 : f32 to vector<16x128xf32>
    %56 = arith.subf %54, %55 : vector<16x128xf32>
    %cst_27 = arith.constant 1.67326319 : f32
    %57 = vector.broadcast %cst_27 : f32 to vector<16x128xf32>
    %58 = arith.mulf %57, %56 : vector<16x128xf32>
    %59 = arith.select %53, %51, %58 : vector<16x128xi1>, vector<16x128xf32>
    %cst_28 = arith.constant 1.05070102 : f32
    %60 = vector.broadcast %cst_28 : f32 to vector<16x128xf32>
    %61 = arith.mulf %60, %59 : vector<16x128xf32>
    %62 = arith.truncf %49 : vector<16x128xf32> to vector<16x128xbf16>
    %63 = arith.truncf %61 : vector<16x128xf32> to vector<16x128xbf16>
    %c0_29 = arith.constant 0 : index
    %c0_30 = arith.constant 0 : index
    %64 = vector.load %arg6[%c0_29, %c0_30] : memref<128x256xbf16, #tpu.memory_space<vmem>>, vector<128x256xbf16>
    %c0_31 = arith.constant 0 : index
    %c0_32 = arith.constant 0 : index
    %65 = vector.load %arg7[%c0_31, %c0_32] : memref<1x256xf32, #tpu.memory_space<vmem>>, vector<1x256xf32>
    %cst_33 = arith.constant dense<0.000000e+00> : vector<16x256xf32>
    %66 = tpu.matmul %62, %64, %cst_33 {dimension_numbers = #tpu.dot_dimension_numbers<[1], [0], [0], [1], [0, 0, 1, 1], [], []>} : vector<16x128xbf16>, vector<128x256xbf16>, vector<16x256xf32> -> vector<16x256xf32>
    %cst_34 = arith.constant dense<0.000000e+00> : vector<16x256xf32>
    %67 = tpu.matmul %63, %64, %cst_34 {dimension_numbers = #tpu.dot_dimension_numbers<[1], [0], [0], [1], [0, 0, 1, 1], [], []>} : vector<16x128xbf16>, vector<128x256xbf16>, vector<16x256xf32> -> vector<16x256xf32>
    %68 = vector.broadcast %65 : vector<1x256xf32> to vector<16x256xf32>
    %69 = arith.addf %66, %68 : vector<16x256xf32>
    %cst_35 = arith.constant 0.000000e+00 : f32
    %70 = vector.broadcast %cst_35 : f32 to vector<16x256xf32>
    %71 = arith.cmpf ogt, %69, %70 : vector<16x256xf32>
    %72 = math.exp %69 : vector<16x256xf32>
    %cst_36 = arith.constant 1.000000e+00 : f32
    %73 = vector.broadcast %cst_36 : f32 to vector<16x256xf32>
    %74 = arith.subf %72, %73 : vector<16x256xf32>
    %cst_37 = arith.constant 1.67326319 : f32
    %75 = vector.broadcast %cst_37 : f32 to vector<16x256xf32>
    %76 = arith.mulf %75, %74 : vector<16x256xf32>
    %77 = arith.select %71, %69, %76 : vector<16x256xi1>, vector<16x256xf32>
    %cst_38 = arith.constant 1.05070102 : f32
    %78 = vector.broadcast %cst_38 : f32 to vector<16x256xf32>
    %79 = arith.mulf %78, %77 : vector<16x256xf32>
    %80 = vector.broadcast %65 : vector<1x256xf32> to vector<16x256xf32>
    %81 = arith.addf %67, %80 : vector<16x256xf32>
    %cst_39 = arith.constant 0.000000e+00 : f32
    %82 = vector.broadcast %cst_39 : f32 to vector<16x256xf32>
    %83 = arith.cmpf ogt, %81, %82 : vector<16x256xf32>
    %84 = math.exp %81 : vector<16x256xf32>
    %cst_40 = arith.constant 1.000000e+00 : f32
    %85 = vector.broadcast %cst_40 : f32 to vector<16x256xf32>
    %86 = arith.subf %84, %85 : vector<16x256xf32>
    %cst_41 = arith.constant 1.67326319 : f32
    %87 = vector.broadcast %cst_41 : f32 to vector<16x256xf32>
    %88 = arith.mulf %87, %86 : vector<16x256xf32>
    %89 = arith.select %83, %81, %88 : vector<16x256xi1>, vector<16x256xf32>
    %cst_42 = arith.constant 1.05070102 : f32
    %90 = vector.broadcast %cst_42 : f32 to vector<16x256xf32>
    %91 = arith.mulf %90, %89 : vector<16x256xf32>
    %92 = arith.truncf %79 : vector<16x256xf32> to vector<16x256xbf16>
    %93 = arith.truncf %91 : vector<16x256xf32> to vector<16x256xbf16>
    %c0_43 = arith.constant 0 : index
    %c0_44 = arith.constant 0 : index
    %94 = vector.load %arg8[%c0_43, %c0_44] : memref<256x64xbf16, #tpu.memory_space<vmem>>, vector<256x64xbf16>
    %c0_45 = arith.constant 0 : index
    %c0_46 = arith.constant 0 : index
    %95 = vector.load %arg9[%c0_45, %c0_46] : memref<1x64xf32, #tpu.memory_space<vmem>>, vector<1x64xf32>
    %cst_47 = arith.constant dense<0.000000e+00> : vector<16x64xf32>
    %96 = tpu.matmul %92, %94, %cst_47 {dimension_numbers = #tpu.dot_dimension_numbers<[1], [0], [0], [1], [0, 0, 1, 1], [], []>} : vector<16x256xbf16>, vector<256x64xbf16>, vector<16x64xf32> -> vector<16x64xf32>
    %cst_48 = arith.constant dense<0.000000e+00> : vector<16x64xf32>
    %97 = tpu.matmul %93, %94, %cst_48 {dimension_numbers = #tpu.dot_dimension_numbers<[1], [0], [0], [1], [0, 0, 1, 1], [], []>} : vector<16x256xbf16>, vector<256x64xbf16>, vector<16x64xf32> -> vector<16x64xf32>
    %98 = vector.broadcast %95 : vector<1x64xf32> to vector<16x64xf32>
    %99 = arith.addf %96, %98 : vector<16x64xf32>
    %cst_49 = arith.constant 0.000000e+00 : f32
    %100 = vector.broadcast %cst_49 : f32 to vector<16x64xf32>
    %101 = arith.cmpf ogt, %99, %100 : vector<16x64xf32>
    %102 = math.exp %99 : vector<16x64xf32>
    %cst_50 = arith.constant 1.000000e+00 : f32
    %103 = vector.broadcast %cst_50 : f32 to vector<16x64xf32>
    %104 = arith.subf %102, %103 : vector<16x64xf32>
    %cst_51 = arith.constant 1.67326319 : f32
    %105 = vector.broadcast %cst_51 : f32 to vector<16x64xf32>
    %106 = arith.mulf %105, %104 : vector<16x64xf32>
    %107 = arith.select %101, %99, %106 : vector<16x64xi1>, vector<16x64xf32>
    %cst_52 = arith.constant 1.05070102 : f32
    %108 = vector.broadcast %cst_52 : f32 to vector<16x64xf32>
    %109 = arith.mulf %108, %107 : vector<16x64xf32>
    %110 = vector.broadcast %95 : vector<1x64xf32> to vector<16x64xf32>
    %111 = arith.addf %97, %110 : vector<16x64xf32>
    %cst_53 = arith.constant 0.000000e+00 : f32
    %112 = vector.broadcast %cst_53 : f32 to vector<16x64xf32>
    %113 = arith.cmpf ogt, %111, %112 : vector<16x64xf32>
    %114 = math.exp %111 : vector<16x64xf32>
    %cst_54 = arith.constant 1.000000e+00 : f32
    %115 = vector.broadcast %cst_54 : f32 to vector<16x64xf32>
    %116 = arith.subf %114, %115 : vector<16x64xf32>
    %cst_55 = arith.constant 1.67326319 : f32
    %117 = vector.broadcast %cst_55 : f32 to vector<16x64xf32>
    %118 = arith.mulf %117, %116 : vector<16x64xf32>
    %119 = arith.select %113, %111, %118 : vector<16x64xi1>, vector<16x64xf32>
    %cst_56 = arith.constant 1.05070102 : f32
    %120 = vector.broadcast %cst_56 : f32 to vector<16x64xf32>
    %121 = arith.mulf %120, %119 : vector<16x64xf32>
    %c0_57 = arith.constant 0 : index
    %c0_58 = arith.constant 0 : index
    %122 = vector.load %arg10[%c0_57, %c0_58] : memref<2x64xf32, #tpu.memory_space<vmem>>, vector<2x64xf32>
    %c0_59 = arith.constant 0 : index
    %c0_60 = arith.constant 0 : index
    %123 = vector.load %arg11[%c0_59, %c0_60] : memref<1x2xf32, #tpu.memory_space<vmem>>, vector<1x2xf32>
    %124 = vector.extract_strided_slice %122 {offsets = [0, 0], sizes = [1, 64], strides = [1, 1]} : vector<2x64xf32> to vector<1x64xf32>
    %125 = vector.broadcast %124 : vector<1x64xf32> to vector<16x64xf32>
    %126 = arith.mulf %109, %125 : vector<16x64xf32>
    %cst_61 = arith.constant dense<0.000000e+00> : vector<16xf32>
    %127 = vector.multi_reduction <add>, %126, %cst_61 [1] : vector<16x64xf32> to vector<16xf32>
    %128 = vector.shape_cast %127 : vector<16xf32> to vector<16x1xf32>
    %129 = vector.extract_strided_slice %123 {offsets = [0, 0], sizes = [1, 1], strides = [1, 1]} : vector<1x2xf32> to vector<1x1xf32>
    %130 = vector.broadcast %129 : vector<1x1xf32> to vector<16x1xf32>
    %131 = arith.addf %128, %130 : vector<16x1xf32>
    %c0_62 = arith.constant 0 : index
    %c0_63 = arith.constant 0 : index
    %132 = vector.load %arg12[%c0_62, %c0_63] : memref<32x2xf32, #tpu.memory_space<vmem>>, vector<16x1xf32>
    tpu.vector_store %arg12[%c0_62, %c0_63], %131 {strides = array<i32>} : memref<32x2xf32, #tpu.memory_space<vmem>>, vector<16x1xf32>,
    %133 = vector.extract_strided_slice %122 {offsets = [1, 0], sizes = [1, 64], strides = [1, 1]} : vector<2x64xf32> to vector<1x64xf32>
    %134 = vector.broadcast %133 : vector<1x64xf32> to vector<16x64xf32>
    %135 = arith.mulf %109, %134 : vector<16x64xf32>
    %cst_64 = arith.constant dense<0.000000e+00> : vector<16xf32>
    %136 = vector.multi_reduction <add>, %135, %cst_64 [1] : vector<16x64xf32> to vector<16xf32>
    %137 = vector.shape_cast %136 : vector<16xf32> to vector<16x1xf32>
    %138 = vector.extract_strided_slice %123 {offsets = [0, 1], sizes = [1, 1], strides = [1, 1]} : vector<1x2xf32> to vector<1x1xf32>
    %139 = vector.broadcast %138 : vector<1x1xf32> to vector<16x1xf32>
    %140 = arith.addf %137, %139 : vector<16x1xf32>
    %c0_65 = arith.constant 0 : index
    %c1 = arith.constant 1 : index
    %141 = vector.load %arg12[%c0_65, %c1] : memref<32x2xf32, #tpu.memory_space<vmem>>, vector<16x1xf32>
    tpu.vector_store %arg12[%c0_65, %c1], %140 {strides = array<i32>} : memref<32x2xf32, #tpu.memory_space<vmem>>, vector<16x1xf32>,
    %142 = vector.extract_strided_slice %122 {offsets = [0, 0], sizes = [1, 64], strides = [1, 1]} : vector<2x64xf32> to vector<1x64xf32>
    %143 = vector.broadcast %142 : vector<1x64xf32> to vector<16x64xf32>
    %144 = arith.mulf %121, %143 : vector<16x64xf32>
    %cst_66 = arith.constant dense<0.000000e+00> : vector<16xf32>
    %145 = vector.multi_reduction <add>, %144, %cst_66 [1] : vector<16x64xf32> to vector<16xf32>
    %146 = vector.shape_cast %145 : vector<16xf32> to vector<16x1xf32>
    %147 = vector.extract_strided_slice %123 {offsets = [0, 0], sizes = [1, 1], strides = [1, 1]} : vector<1x2xf32> to vector<1x1xf32>
    %148 = vector.broadcast %147 : vector<1x1xf32> to vector<16x1xf32>
    %149 = arith.addf %146, %148 : vector<16x1xf32>
    %c16_67 = arith.constant 16 : index
    %c0_68 = arith.constant 0 : index
    %150 = vector.load %arg12[%c16_67, %c0_68] : memref<32x2xf32, #tpu.memory_space<vmem>>, vector<16x1xf32>
    tpu.vector_store %arg12[%c16_67, %c0_68], %149 {strides = array<i32>} : memref<32x2xf32, #tpu.memory_space<vmem>>, vector<16x1xf32>,
    %151 = vector.extract_strided_slice %122 {offsets = [1, 0], sizes = [1, 64], strides = [1, 1]} : vector<2x64xf32> to vector<1x64xf32>
    %152 = vector.broadcast %151 : vector<1x64xf32> to vector<16x64xf32>
    %153 = arith.mulf %121, %152 : vector<16x64xf32>
    %cst_69 = arith.constant dense<0.000000e+00> : vector<16xf32>
    %154 = vector.multi_reduction <add>, %153, %cst_69 [1] : vector<16x64xf32> to vector<16xf32>
    %155 = vector.shape_cast %154 : vector<16xf32> to vector<16x1xf32>
    %156 = vector.extract_strided_slice %123 {offsets = [0, 1], sizes = [1, 1], strides = [1, 1]} : vector<1x2xf32> to vector<1x1xf32>
    %157 = vector.broadcast %156 : vector<1x1xf32> to vector<16x1xf32>
    %158 = arith.addf %155, %157 : vector<16x1xf32>
    %c16_70 = arith.constant 16 : index
    %c1_71 = arith.constant 1 : index
    %159 = vector.load %arg12[%c16_70, %c1_71] : memref<32x2xf32, #tpu.memory_space<vmem>>, vector<16x1xf32>
    tpu.vector_store %arg12[%c16_70, %c1_71], %158 {strides = array<i32>} : memref<32x2xf32, #tpu.memory_space<vmem>>, vector<16x1xf32>,
    return
  }
  func.func @transform_0(%arg0: i32) -> (i32, i32) {
    %c0_i32 = arith.constant 0 : i32
    %c0_i32_0 = arith.constant 0 : i32
    return %arg0, %c0_i32 : i32, i32
  }
  func.func @transform_1(%arg0: i32) -> (i32, i32) {
    %c0_i32 = arith.constant 0 : i32
    %c0_i32_0 = arith.constant 0 : i32
    %c0_i32_1 = arith.constant 0 : i32
    return %c0_i32, %c0_i32_0 : i32, i32
  }
  func.func @transform_2(%arg0: i32) -> (i32, i32) {
    %c0_i32 = arith.constant 0 : i32
    %c0_i32_0 = arith.constant 0 : i32
    %c0_i32_1 = arith.constant 0 : i32
    return %c0_i32, %c0_i32_0 : i32, i32
  }
  func.func @transform_3(%arg0: i32) -> (i32, i32) {
    %c0_i32 = arith.constant 0 : i32
    %c0_i32_0 = arith.constant 0 : i32
    %c0_i32_1 = arith.constant 0 : i32
    return %c0_i32, %c0_i32_0 : i32, i32
  }
  func.func @transform_4(%arg0: i32) -> (i32, i32) {
    %c0_i32 = arith.constant 0 : i32
    %c0_i32_0 = arith.constant 0 : i32
    %c0_i32_1 = arith.constant 0 : i32
    return %c0_i32, %c0_i32_0 : i32, i32
  }
  func.func @transform_5(%arg0: i32) -> (i32, i32) {
    %c0_i32 = arith.constant 0 : i32
    %c0_i32_0 = arith.constant 0 : i32
    %c0_i32_1 = arith.constant 0 : i32
    return %c0_i32, %c0_i32_0 : i32, i32
  }
  func.func @transform_6(%arg0: i32) -> (i32, i32) {
    %c0_i32 = arith.constant 0 : i32
    %c0_i32_0 = arith.constant 0 : i32
    %c0_i32_1 = arith.constant 0 : i32
    return %c0_i32, %c0_i32_0 : i32, i32
  }
  func.func @transform_7(%arg0: i32) -> (i32, i32) {
    %c0_i32 = arith.constant 0 : i32
    %c0_i32_0 = arith.constant 0 : i32
    %c0_i32_1 = arith.constant 0 : i32
    return %c0_i32, %c0_i32_0 : i32, i32
  }
  func.func @transform_8(%arg0: i32) -> (i32, i32) {
    %c0_i32 = arith.constant 0 : i32
    %c0_i32_0 = arith.constant 0 : i32
    %c0_i32_1 = arith.constant 0 : i32
    return %c0_i32, %c0_i32_0 : i32, i32
  }
  func.func @transform_9(%arg0: i32) -> (i32, i32) {
    %c0_i32 = arith.constant 0 : i32
    %c0_i32_0 = arith.constant 0 : i32
    %c0_i32_1 = arith.constant 0 : i32
    return %c0_i32, %c0_i32_0 : i32, i32
  }
  func.func @transform_10(%arg0: i32) -> (i32, i32) {
    %c0_i32 = arith.constant 0 : i32
    %c0_i32_0 = arith.constant 0 : i32
    %c0_i32_1 = arith.constant 0 : i32
    return %c0_i32, %c0_i32_0 : i32, i32
  }
  func.func @transform_11(%arg0: i32) -> (i32, i32) {
    %c0_i32 = arith.constant 0 : i32
    %c0_i32_0 = arith.constant 0 : i32
    return %arg0, %c0_i32 : i32, i32
  }
}

</mosaic_0001>

<bundles_post_ra>
// kernel: tpu_custom_call.1
= control target key start
LH: loop header
LB: loop body
LE: loop exit
PB: predicated region body
PF: predicated region fallthrough
CT: control target
= control target key end

     0   :  { %16 = vsyncpa [#allocation3], 0  ;;  %s2582_s0 = inlined_call_operand.vmem [shape: f32[40,45], index: 0, kind: input, shape index: {}]   ;;  %s2583_s1 = inlined_call_operand.hbm [shape: bf16[45,64], index: 1, kind: input, shape index: {}]   ;;  %s2584_s2 = inlined_call_operand.hbm [shape: f32[1,64], index: 2, kind: input, shape index: {}]   ;;  %s2585_s3 = inlined_call_operand.vmem [shape: bf16[64,128], index: 3, kind: input, shape index: {}]   ;;  %s2586_s4 = inlined_call_operand.hbm [shape: f32[1,128], index: 4, kind: input, shape index: {}]   ;;  %s2587_s5 = inlined_call_operand.vmem [shape: bf16[128,256], index: 5, kind: input, shape index: {}]   ;;  %s2588_s6 = inlined_call_operand.vmem [shape: f32[1,256], index: 6, kind: input, shape index: {}]   ;;  %s2589_s7 = inlined_call_operand.vmem [shape: bf16[256,64], index: 7, kind: input, shape index: {}]   ;;  %s2590_s8 = inlined_call_operand.vmem [shape: f32[1,64], index: 8, kind: input, shape index: {}]   ;;  %s2591_s9 = inlined_call_operand.vmem [shape: f32[2,64], index: 9, kind: input, shape index: {}]   ;;  %s2592_s10 = inlined_call_operand.vmem [shape: f32[1,2], index: 10, kind: input, shape index: {}]   ;;  %s2593_s11 = inlined_call_operand.vmem [shape: f32[40,2], index: 11, kind: output, shape index: {}]  }
   0x1   :  { %17 = vsyncpa [#allocation5], 0  ;;  %s2254_s17 = smov 0   ;;  %s2256_s18 = smov 0  }
   0x2   :  { %s2258_s19 = smov 0  }
   0x3 LB: > { %s2267_s20 = sadd.s32 4294967295, %s2151_s19   ;;  %s2269_s21 = sadd.s32 1, %s2151_s19   ;;  %s2151_s19 = sphi %s2258_s19, %s2602_s19   ;;  %s2147_s18 = sphi %s2256_s18, %s2601_s18   ;;  %s2143_s17 = sphi %s2254_s17, %s2600_s17  }
   0x4   : > { %s263_s22 = ssub.s32 %s2151_s19, %s2269_s21  ;;  %s266_s23 = sadd.s32 1, %s2147_s18 }
   0x5   : > { %p264_p0 = scmp.eq.s32.totalorder %s263_s22, 0  ;;  %p276_p1 = scmp.ne.s32.totalorder %s2147_s18, %s2143_s17 }
   0x6   : > { %p277_p2 = scmp.eq.s32.totalorder %s2267_s20, 1  ;;  %p1594_p3 = scmp.ge.s32.totalorder %s2151_s19, 1 }
   0x7   : > { %s2277_s24 = scalar_select %p264_p0, %s2147_s18, %s266_s23  }
   0x8   : > { %p2279_p4 = por %p277_p2, %p276_p1  ;;  %p290_p5 = scmp.lt.s32.totalorder %s2151_s19, 3 }
   0x9   : > { %p1821_p6 = scmp.eq.s32.totalorder %s2267_s20, 0  ;;  %s2185_s27 = smov [#allocation4]  }
   0xa   : > { %p2284_p7 = pnand %p1594_p3, %p290_p5  ;;  %s316_s28 = sshll.u32 %s2185_s27, 4  ;;  %s317_s28 = int_to_ptr.vmem [resolvable:$true] %s316_s28 }
   0xb   : > { %s2186_s29 = smov [#allocation2]   ;;  %s2187_s13 = smov [#allocation6]  }
   0xc   : > { %p1811_p8 = pneg %p2284_p7  ;;  %s302_s30 = sshll.u32 %s2186_s29, 4  ;;  %s2296_s30 = int_to_ptr.vmem [resolvable:$true] %s302_s30 }
   0xd   : > { %s330_s14 = sshll.u32 %s2187_s13, 4  ;;  %s2022_s15 = scalar_lea.vmem %s317_s28, 16  ;;  %s331_s14 = int_to_ptr.vmem [resolvable:$true] %s330_s14 }
   0xe   : > { %p2292_p9 = pnand %p1821_p6, %p1811_p8  ;;  %p2023_p11 = scmp.ne.s32.totalorder %s317_s28, %s2022_s15 }
   0xf   : > { %s2029_s16 = scalar_lea.vmem %s317_s28, 32  ;;  %p2030_p0 = scmp.lt.s32.totalorder %s317_s28, %s317_s28 }
  0x10   : > { %p2013_p10 = pneg %p2292_p9  ;;  %p2031_p1 = scmp.lt.s32.totalorder %s2029_s16, %s2022_s15 }
  0x12   : > { %p2025_p12 = pnand %p2023_p11, %p2013_p10  ;;  %p2032_p2 = por %p2031_p1, %p2030_p0 }
  0x14   : > { %p2026_p13 = pneg %p2025_p12 }
  0x16   : > { %p2033_p3 = pnand %p2032_p2, %p2026_p13 }
  0x18   : > { %2036 = shalt.err (!%p2033_p3)
}
  0x19   : > { %1817 = dma.hbm_to_vmem [thread:$0]  (!%p2292_p9), %s2584_s2, 16, %s317_s28, [#allocation5]  }
  0x1a   : > { %s2048_s23 = scalar_lea.vmem %s2296_s30, 384  ;;  %p2056_p12 = scmp.lt.s32.totalorder %s2296_s30, %s2296_s30 }
  0x1b   : > { %p2049_p5 = scmp.ne.s32.totalorder %s2296_s30, %s2048_s23  ;;  %p2057_p13 = scmp.lt.s32.totalorder %s2048_s23, %s2048_s23 }
  0x1d   : > { %p2051_p8 = pnand %p2049_p5, %p2013_p10  ;;  %p2058_p0 = por %p2057_p13, %p2056_p12 }
  0x1f   : > { %p2052_p11 = pneg %p2051_p8 }
  0x21   : > { %p2059_p1 = pnand %p2058_p0, %p2052_p11 }
  0x23   : > { %2062 = shalt.err (!%p2059_p1)
}
  0x24   : > { %s2188_s27 = smov 64   ;;  %s2189_s29 = smov 4  }
  0x25   : > { %1814 = dma.hbm_to_vmem [thread:$0]  (!%p2292_p9), %s2583_s1, 384, %s2296_s30, [#allocation3], %s2188_s27, %s2188_s27, %s2189_s29  }
  0x26   : > { %s2074_s15 = scalar_lea.vmem %s331_s14, 16  ;;  %s2081_s16 = scalar_lea.vmem %s331_s14, 32 }
  0x27   : > { %p2075_p2 = scmp.ne.s32.totalorder %s331_s14, %s2074_s15  ;;  %p2082_p8 = scmp.lt.s32.totalorder %s331_s14, %s331_s14 }
  0x28   : > { %p2083_p11 = scmp.lt.s32.totalorder %s2081_s16, %s2074_s15 }
  0x29   : > { %p2077_p3 = pnand %p2075_p2, %p2013_p10 }
  0x2a   : > { %p2084_p12 = por %p2083_p11, %p2082_p8 }
  0x2b   : > { %p2078_p5 = pneg %p2077_p3 }
  0x2d   : > { %p2085_p13 = pnand %p2084_p12, %p2078_p5 }
  0x2f   : > { %2088 = shalt.err (!%p2085_p13)
}
  0x30   : > { %1820 = dma.hbm_to_vmem [thread:$0]  (!%p2292_p9), %s2586_s4, 16, %s331_s14, [#allocation5]  }
  0x31   : > { %378 = sbr.rel (%p2284_p7) target bundleno = 1167 (0x48f), region = 64 }
  0x36   : > { %2134 = dma.done.wait (%p1821_p6), [#allocation3], 384  }
  0x37   : > { %2136 = vsyncadd (%p1821_p6), [#allocation3], 4294966912 }
  0x38   : > { %2138 = dma.done.wait (%p1821_p6), [#allocation5], 32  }
  0x39   : > { %2140 = vsyncadd (%p1821_p6), [#allocation5], 4294967264  ;;  %vm489_vm0 = vcmask 1045504   ;;  %v2190_v0 = vmov 0.0   ;;  %s2340_s30 = sshll.u32 %s2267_s20, 2  ;;  %vm2191_vm1 = vmmov 0  }
  0x3a   : > { %1755 = vmatprep.subr.bf16.mxu0 %v2190_v0  ;;  %1765 = vmatprep.subr.bf16.mxu1 %v2190_v0  ;;  %p434_p7 = scmp.lt.s32.totalorder %s2340_s30, 4  ;;  %vm490_vm2 = vcmask 1046528   ;;  %v2192_v1 = vmov 65535   ;;  %v1924_v4 = vld [vmem:[#allocation2 + $0x10] sm:$0x7f]   ;;  %v1925_v6 = vld [vmem:[#allocation2 + $0x8] sm:$0xff]  }
  0x3b   : > { %1761 = vmatprep.mubr.msk.bf16.mxu0 %vm2191_vm1, %v2190_v0  ;;  %1771 = vmatprep.mubr.msk.bf16.mxu1 %vm2191_vm1, %v2190_v0  ;;  %v491_v2 = vsel %vm489_vm0, 4294967295, %v2192_v1  ;;  %v1926_v7 = vld [vmem:[#allocation2] sm:$0xff]   ;;  %vm485_vm3 = vcmask 367616   ;;  %v1927_v14 = vld [vmem:[%s2585_s3 + $0x18] sm:$0xff]   ;;  %v1928_v15 = vld [vmem:[%s2585_s3 + $0x10] sm:$0xff]   ;;  %vm650_vm8 = vcmask 523264  }
  0x3c   : > { %s435_s26 = scalar_select %p434_p7, %s2340_s30, 4  ;;  %v492_v3 = vsel %vm490_vm2, %v491_v2, 0  ;;  %v1929_v16 = vld [vmem:[%s2585_s3 + $0x8] sm:$0xff]   ;;  %v1930_v17 = vld [vmem:[%s2585_s3] sm:$0xff]   ;;  %v1606_v18 = vld [vmem:[#allocation4] ss:$0 sm:$0xff] }
  0x3d   : > { %v494_v5 = vand.u32 %v1924_v4, %v492_v3  ;;  %v1933_v57 = vld [vmem:[%s2587_s5 + $0x74] ss:$8 sps:$4 sm:$0xff]   ;;  %v1931_v58 = vld [vmem:[%s2587_s5 + $0x70] ss:$8 sps:$4 sm:$0xff]   ;;  %v1936_v59 = vld [vmem:[%s2587_s5 + $0x64] ss:$8 sps:$4 sm:$0xff]  }
  0x3e   : > { %s1605_s12 = sshll.u32 %s435_s26, 3  ;;  %v1934_v60 = vld [vmem:[%s2587_s5 + $0x60] ss:$8 sps:$4 sm:$0xff]   ;;  %v1939_v61 = vld [vmem:[%s2587_s5 + $0x54] ss:$8 sps:$4 sm:$0xff]   ;;  %s426_s22 = sand.u32 1, %s2143_s17  }
  0x3f   : > { %s437_s27 = scalar_lea.vmem %s2582_s0, %s1605_s12  ;;  %1756 = vmatpush3.bf16.msra.mxu0 %v494_v5  ;;  %1766 = vmatpush3.bf16.msra.mxu1 %v494_v5  ;;  %v1937_v62 = vld [vmem:[%s2587_s5 + $0x50] ss:$8 sps:$4 sm:$0xff]   ;;  %v1942_v63 = vld [vmem:[%s2587_s5 + $0x44] ss:$8 sps:$4 sm:$0xff]   ;;  %v1945_v1 = vld [vmem:[%s2587_s5 + $0x34] ss:$8 sps:$4 sm:$0xff]  }
  0x40   : > { %1757 = vmatprep.subr.bf16.mxu0 %v2190_v0  ;;  %1767 = vmatprep.subr.bf16.mxu1 %v2190_v0  ;;  %v449_v8 = vld [vmem:[%s437_s27] sm:$0xff]  ;;  %v450_v9 = vld [vmem:[%s437_s27 + $0x8] sm:$0xff]  ;;  %v452_v10 = vld [vmem:[%s437_s27 + $0x10] sm:$0xff]  ;;  %s1603_s26 = sshll.u32 %s426_s22, 5  ;;  %s1342_s17 = ssub.s32 (%p2279_p4), 5, %s2340_s30 }
  0x41   : > { %v453_v11 = vld [vmem:[%s437_s27 + $0x18] sm:$0xff]  ;;  %v451_v12 = vpack.c.bf16 %v450_v9, %v449_v8  ;;  %v1948_v3 = vld [vmem:[%s2587_s5 + $0x24] ss:$8 sps:$4 sm:$0xff]   ;;  %v1946_v4 = vld [vmem:[%s2587_s5 + $0x20] ss:$8 sps:$4 sm:$0xff]   ;;  %v2193_v9 = vmov 0  }
  0x42   : > { %v454_v13 = vpack.c.bf16 %v453_v11, %v452_v10  ;;  %v1943_v2 = vld [vmem:[%s2587_s5 + $0x30] ss:$8 sps:$4 sm:$0xff]   ;;  %v1951_v5 = vld [vmem:[%s2587_s5 + $0x14] ss:$8 sps:$4 sm:$0xff]   ;;  %v1952_v8 = vld [vmem:[%s2587_s5] ss:$8 sps:$4 sm:$0xff]  }
  0x43   : > { %1758 = vmatpush3.bf16.msra.mxu0 %v1925_v6  ;;  %1768 = vmatpush3.bf16.msra.mxu1 %v1925_v6  ;;  %v1949_v6 = vld [vmem:[%s2587_s5 + $0x10] ss:$8 sps:$4 sm:$0xff]   ;;  %s2508_s23 = scalar_lea.vmem [#allocation7], %s1603_s26   ;;  %s1690_s27 = sshll.u32 (%p2279_p4), %s2267_s20, 5 }
  0x44   : > { %1759 = vmatprep.subr.bf16.mxu0 %v2190_v0  ;;  %1769 = vmatprep.subr.bf16.mxu1 %v2190_v0  ;;  %v1616_v10 = vld [vmem:[#allocation6] ss:$0 sm:$0xff]  ;;  %p1343_p6 = scmp.lt.s32.totalorder (%p2279_p4), %s1342_s17, 4  ;;  %s2533_s28 = scalar_lea.vmem (%p2279_p4), %s2593_s11, %s1690_s27  }
  0x47   : > { %1760 = vmatpush3.bf16.msra.mxu0 %v1926_v7  ;;  %1770 = vmatpush3.bf16.msra.mxu1 %v1926_v7  ;;  %v1954_v7 = vld [vmem:[%s2587_s5 + $0x4] ss:$8 sps:$4 sm:$0xff]  }
  0x48   : > { %1775 = vmatprep.subr.bf16.mxu0 %v2190_v0  ;;  %1787 = vmatprep.subr.bf16.mxu1 %v2190_v0 }
  0x4a   : > { %1762 = vmatmul.mubr.msk.bf16.vlgmr.msra.gmra.mxu0 %vm485_vm3, %v451_v12  ;;  %1772 = vmatmul.mubr.msk.bf16.vlgmr.msra.gmra.mxu1 %vm485_vm3, %v454_v13 }
  0x4b   : > { %1783 = vmatprep.mubr.msk.bf16.mxu0 %vm2191_vm1, %v2190_v0  ;;  %1795 = vmatprep.mubr.msk.bf16.mxu1 %vm2191_vm1, %v2190_v0 }
  0x4c   : > { %1776 = vmatpush3.bf16.msra.mxu0 %v1927_v14  ;;  %1788 = vmatpush3.bf16.msra.mxu1 %v1927_v14 }
  0x4d   : > { %1777 = vmatprep.subr.bf16.mxu0 %v2190_v0  ;;  %1789 = vmatprep.subr.bf16.mxu1 %v2190_v0 }
  0x50   : > { %1778 = vmatpush3.bf16.msra.mxu0 %v1928_v15  ;;  %1790 = vmatpush3.bf16.msra.mxu1 %v1928_v15 }
  0x51   : > { %1779 = vmatprep.subr.bf16.mxu0 %v2190_v0  ;;  %1791 = vmatprep.subr.bf16.mxu1 %v2190_v0 }
  0x54   : > { %1780 = vmatpush3.bf16.msra.mxu0 %v1929_v16  ;;  %1792 = vmatpush3.bf16.msra.mxu1 %v1929_v16 }
  0x55   : > { %1781 = vmatprep.subr.bf16.mxu0 %v2190_v0  ;;  %1793 = vmatprep.subr.bf16.mxu1 %v2190_v0  ;;  %v1940_v0 = vld [vmem:[%s2587_s5 + $0x40] ss:$8 sps:$4 sm:$0xff]  }
  0x58   : > { %1782 = vmatpush3.bf16.msra.mxu0 %v1930_v17  ;;  %1794 = vmatpush3.bf16.msra.mxu1 %v1930_v17 }
  0x59   : > { %877 = vmatprep.subr.bf16.mxu0 %v1933_v57  ;;  %948 = vmatprep.subr.bf16.mxu1 %v1933_v57  ;;  %v1963_v57 = vld [vmem:[%s2589_s7 + $0x58] sm:$0xff]  }
 0x10a   : > { %v530_v19 = vpop.f32.mrf.mxu0  ;;  %v588_v20 = vpop.f32.mrf.mxu1 }
 0x10b   : > { %v531_v21 = vadd.f32 %v1606_v18, %v530_v19  ;;  %v589_v22 = vadd.f32 %v1606_v18, %v588_v20 }
 0x10c   : > { %v1763_v23 = vpop.f32.mrf.mxu0  ;;  %v1773_v24 = vpop.f32.mrf.mxu1 }
 0x10d   : > { %v539_v25 = vmul.f32 1.442695, %v531_v21  ;;  %v597_v26 = vmul.f32 1.442695, %v589_v22  ;;  %vm537_vm4 = vcmp.gt.f32.partialorder %v531_v21, 0.0  ;;  %vm595_vm5 = vcmp.gt.f32.partialorder %v589_v22, 0.0 }
 0x10e   : > { %v533_v27 = vpop.f32.mrf.mxu0  ;;  %v591_v28 = vpop.f32.mrf.mxu1 }
 0x10f   : > { %1971 = vpow2.f32 %v539_v25  ;;  %v534_v29 = vadd.f32 %v1606_v18, %v533_v27  ;;  %v592_v30 = vadd.f32 %v1606_v18, %v591_v28 }
 0x110   : > { %1973 = vpow2.f32 %v597_v26  ;;  %v1764_v31 = vpop.f32.mrf.mxu0  ;;  %v1774_v32 = vpop.f32.mrf.mxu1 }
 0x111   : > { %v541_v33 = vmul.f32 1.442695, %v534_v29  ;;  %v599_v34 = vmul.f32 1.442695, %v592_v30  ;;  %vm538_vm6 = vcmp.gt.f32.partialorder %v534_v29, 0.0  ;;  %vm596_vm7 = vcmp.gt.f32.partialorder %v592_v30, 0.0 }
 0x113   : > { %1975 = vpow2.f32 %v541_v33 }
 0x114   : > { %1977 = vpow2.f32 %v599_v34 }
 0x11c   : > { %v1972_v35 = vpop.eup %1971 }
 0x11d   : > { %v1974_v36 = vpop.eup %1973  ;;  %v1611_v37 = vadd.f32 -1.0, %v1972_v35 }
 0x11e   : > { %v1614_v38 = vadd.f32 -1.0, %v1974_v36 }
 0x11f   : > { %v545_v39 = vmul.f32 1.6732632, %v1611_v37 }
 0x120   : > { %v1976_v40 = vpop.eup %1975  ;;  %v603_v41 = vmul.f32 1.6732632, %v1614_v38 }
 0x121   : > { %v1978_v42 = vpop.eup %1977  ;;  %v1612_v43 = vadd.f32 -1.0, %v1976_v40  ;;  %v547_v45 = vsel %vm537_vm4, %v531_v21, %v545_v39 }
 0x122   : > { %v1615_v44 = vadd.f32 -1.0, %v1978_v42  ;;  %v605_v47 = vsel %vm595_vm5, %v589_v22, %v603_v41  ;;  %v549_v50 = vmul.f32 1.050701, %v547_v45 }
 0x123   : > { %v546_v46 = vmul.f32 1.6732632, %v1612_v43  ;;  %v607_v53 = vmul.f32 1.050701, %v605_v47 }
 0x124   : > { %v604_v48 = vmul.f32 1.6732632, %v1615_v44 }
 0x125   : > { %v548_v49 = vsel %vm538_vm6, %v534_v29, %v546_v46 }
 0x126   : > { %v550_v51 = vmul.f32 1.050701, %v548_v49  ;;  %v606_v52 = vsel %vm596_vm7, %v592_v30, %v604_v48  ;;  %v1955_v49 = vld [vmem:[%s2589_s7 + $0x78] sm:$0xff]  }
 0x127   : > { %v608_v54 = vmul.f32 1.050701, %v606_v52  ;;  %v1958_v52 = vld [vmem:[%s2589_s7 + $0x30] sm:$0xff]  }
 0x128   : > { %v609_v55 = vpack.c.bf16 %v550_v51, %v549_v50  ;;  %v1956_v50 = vld [vmem:[%s2589_s7 + $0x38] sm:$0xff]   ;;  %v1957_v51 = vld [vmem:[%s2589_s7 + $0x70] sm:$0xff]  }
 0x129   : > { %v610_v56 = vpack.c.bf16 %v608_v54, %v607_v53  ;;  %v1959_v53 = vld [vmem:[%s2589_s7 + $0x68] sm:$0xff]  }
 0x12a   : > { %1784 = vmatmul.mubr.msk.bf16.vlgmr.msra.gmra.mxu0 %vm650_vm8, %v609_v55  ;;  %v1960_v54 = vld [vmem:[%s2589_s7 + $0x28] sm:$0xff]   ;;  %v1961_v55 = vld [vmem:[%s2589_s7 + $0x60] sm:$0xff]  }
 0x12b   : > { %1796 = vmatmul.mubr.msk.bf16.vlgmr.msra.gmra.mxu1 %vm650_vm8, %v610_v56  ;;  %878 = vmatpush1.bf16.msra.mxu0 %v1931_v58  ;;  %v1962_v56 = vld [vmem:[%s2589_s7 + $0x20] sm:$0xff]  }
 0x12c   : > { %949 = vmatpush1.bf16.msra.mxu1 %v1931_v58  ;;  %879 = vmatprep.subr.bf16.mxu0 %v1936_v59  ;;  %v1964_v58 = vld [vmem:[%s2589_s7 + $0x18] sm:$0xff]  }
 0x12d   : > { %950 = vmatprep.subr.bf16.mxu1 %v1936_v59  ;;  %909 = vmatprep.mubr.bf16.mxu0 %v2193_v9  ;;  %v1965_v59 = vld [vmem:[%s2589_s7 + $0x50] sm:$0xff]  }
 0x12e   : > { %980 = vmatprep.mubr.bf16.mxu1 %v2193_v9 }
 0x12f   : > { %880 = vmatpush1.bf16.msra.mxu0 %v1934_v60 }
 0x130   : > { %951 = vmatpush1.bf16.msra.mxu1 %v1934_v60  ;;  %881 = vmatprep.subr.bf16.mxu0 %v1939_v61  ;;  %v1966_v60 = vld [vmem:[%s2589_s7 + $0x10] sm:$0xff]  }
 0x131   : > { %952 = vmatprep.subr.bf16.mxu1 %v1939_v61  ;;  %v1967_v61 = vld [vmem:[%s2589_s7 + $0x48] sm:$0xff]  }
 0x133   : > { %882 = vmatpush1.bf16.msra.mxu0 %v1937_v62 }
 0x134   : > { %953 = vmatpush1.bf16.msra.mxu1 %v1937_v62  ;;  %883 = vmatprep.subr.bf16.mxu0 %v1942_v63  ;;  %v1968_v62 = vld [vmem:[%s2589_s7 + $0x8] sm:$0xff]  }
 0x135   : > { %954 = vmatprep.subr.bf16.mxu1 %v1942_v63  ;;  %v1969_v63 = vld [vmem:[%s2589_s7 + $0x40] sm:$0xff]  }
 0x137   : > { %884 = vmatpush1.bf16.msra.mxu0 %v1940_v0 }
 0x138   : > { %955 = vmatpush1.bf16.msra.mxu1 %v1940_v0  ;;  %885 = vmatprep.subr.bf16.mxu0 %v1945_v1  ;;  %v1970_v0 = vld [vmem:[%s2589_s7] sm:$0xff]  }
 0x139   : > { %956 = vmatprep.subr.bf16.mxu1 %v1945_v1  ;;  %v787_v1 = vlaneseq }
 0x13b   : > { %886 = vmatpush1.bf16.msra.mxu0 %v1943_v2 }
 0x13c   : > { %957 = vmatpush1.bf16.msra.mxu1 %v1943_v2  ;;  %887 = vmatprep.subr.bf16.mxu0 %v1948_v3  ;;  %v2461_v2 = vshrl.u32 %v787_v1, 7 }
 0x13d   : > { %958 = vmatprep.subr.bf16.mxu1 %v1948_v3 }
 0x13e   : > { %v789_v3 = vsub.s32 0, %v2461_v2 }
 0x13f   : > { %888 = vmatpush1.bf16.msra.mxu0 %v1946_v4 }
 0x140   : > { %959 = vmatpush1.bf16.msra.mxu1 %v1946_v4  ;;  %889 = vmatprep.subr.bf16.mxu0 %v1951_v5  ;;  %v785_v4 = vld [vmem:[%s2588_s6] sm:$0x3] }
 0x141   : > { %960 = vmatprep.subr.bf16.mxu1 %v1951_v5  ;;  %v793_v5 = vsub.s32 1, %v2461_v2 }
 0x143   : > { %890 = vmatpush1.bf16.msra.mxu0 %v1949_v6 }
 0x144   : > { %961 = vmatpush1.bf16.msra.mxu1 %v1949_v6  ;;  %891 = vmatprep.subr.bf16.mxu0 %v1954_v7  ;;  %v790_v6 = vrot.slane %v785_v4, %v789_v3 }
 0x145   : > { %962 = vmatprep.subr.bf16.mxu1 %v1954_v7  ;;  %v794_v7 = vrot.slane %v785_v4, %v793_v5 }
 0x147   : > { %892 = vmatpush1.bf16.msra.mxu0 %v1952_v8 }
 0x148   : > { %963 = vmatpush1.bf16.msra.mxu1 %v1952_v8  ;;  %1711 = vmatprep.subr.bf16.mxu0 %v1955_v49 }
 0x149   : > { %1733 = vmatprep.subr.bf16.mxu1 %v1955_v49 }
 0x1ea   : > { %v688_v11 = vpop.f32.mrf.mxu0 }
 0x1eb   : > { %v689_v12 = vadd.f32 %v1616_v10, %v688_v11  ;;  %v746_v13 = vpop.f32.mrf.mxu1 }
 0x1ec   : > { %v747_v14 = vadd.f32 %v1616_v10, %v746_v13  ;;  %v1785_v15 = vpop.f32.mrf.mxu0 }
 0x1ed   : > { %v697_v16 = vmul.f32 1.442695, %v689_v12  ;;  %v1797_v17 = vpop.f32.mrf.mxu1  ;;  %vm695_vm9 = vcmp.gt.f32.partialorder %v689_v12, 0.0 }
 0x1ee   : > { %v755_v18 = vmul.f32 1.442695, %v747_v14  ;;  %v691_v19 = vpop.f32.mrf.mxu0  ;;  %vm753_vm10 = vcmp.gt.f32.partialorder %v747_v14, 0.0 }
 0x1ef   : > { %1979 = vpow2.f32 %v697_v16  ;;  %v692_v20 = vadd.f32 %v1616_v10, %v691_v19  ;;  %v749_v21 = vpop.f32.mrf.mxu1 }
 0x1f0   : > { %1981 = vpow2.f32 %v755_v18  ;;  %v750_v22 = vadd.f32 %v1616_v10, %v749_v21  ;;  %v1786_v23 = vpop.f32.mrf.mxu0 }
 0x1f1   : > { %v699_v24 = vmul.f32 1.442695, %v692_v20  ;;  %v1798_v25 = vpop.f32.mrf.mxu1  ;;  %vm696_vm11 = vcmp.gt.f32.partialorder %v692_v20, 0.0 }
 0x1f2   : > { %v757_v26 = vmul.f32 1.442695, %v750_v22  ;;  %vm754_vm12 = vcmp.gt.f32.partialorder %v750_v22, 0.0 }
 0x1f3   : > { %1983 = vpow2.f32 %v699_v24 }
 0x1f4   : > { %1985 = vpow2.f32 %v757_v26 }
 0x1fc   : > { %v1980_v27 = vpop.eup %1979 }
 0x1fd   : > { %v1982_v28 = vpop.eup %1981  ;;  %v1622_v29 = vadd.f32 -1.0, %v1980_v27 }
 0x1fe   : > { %v1625_v30 = vadd.f32 -1.0, %v1982_v28 }
 0x1ff   : > { %v703_v31 = vmul.f32 1.6732632, %v1622_v29 }
 0x200   : > { %v1984_v32 = vpop.eup %1983  ;;  %v761_v33 = vmul.f32 1.6732632, %v1625_v30 }
 0x201   : > { %v1986_v34 = vpop.eup %1985  ;;  %v1623_v35 = vadd.f32 -1.0, %v1984_v32  ;;  %v705_v37 = vsel %vm695_vm9, %v689_v12, %v703_v31 }
 0x202   : > { %v1626_v36 = vadd.f32 -1.0, %v1986_v34  ;;  %v763_v39 = vsel %vm753_vm10, %v747_v14, %v761_v33  ;;  %v707_v42 = vmul.f32 1.050701, %v705_v37  ;;  %vm1290_vm10 = vcmask 7168  }
 0x203   : > { %v704_v38 = vmul.f32 1.6732632, %v1623_v35  ;;  %v765_v45 = vmul.f32 1.050701, %v763_v39 }
 0x204   : > { %v762_v40 = vmul.f32 1.6732632, %v1626_v36 }
 0x205   : > { %v706_v41 = vsel %vm696_vm11, %v692_v20, %v704_v38 }
 0x206   : > { %v708_v43 = vmul.f32 1.050701, %v706_v41  ;;  %v764_v44 = vsel %vm754_vm12, %v750_v22, %v762_v40 }
 0x207   : > { %v766_v46 = vmul.f32 1.050701, %v764_v44 }
 0x208   : > { %v767_v47 = vpack.c.bf16 %v708_v43, %v707_v42 }
 0x209   : > { %v768_v48 = vpack.c.bf16 %v766_v46, %v765_v45 }
 0x20a   : > { %910 = vmatmul.mubr.bf16.vlgmr.msra.gmra.mxu0 %v767_v47 }
 0x20b   : > { %981 = vmatmul.mubr.bf16.vlgmr.msra.gmra.mxu1 %v768_v48  ;;  %1712 = vmatpush3.bf16.msra.mxu0 %v1956_v50 }
 0x20c   : > { %1734 = vmatpush3.bf16.msra.mxu1 %v1956_v50  ;;  %1713 = vmatprep.subr.bf16.mxu0 %v1957_v51 }
 0x20d   : > { %1735 = vmatprep.subr.bf16.mxu1 %v1957_v51 }
 0x20f   : > { %1714 = vmatpush3.bf16.msra.mxu0 %v1958_v52 }
 0x210   : > { %1736 = vmatpush3.bf16.msra.mxu1 %v1958_v52  ;;  %1715 = vmatprep.subr.bf16.mxu0 %v1959_v53 }
 0x211   : > { %1737 = vmatprep.subr.bf16.mxu1 %v1959_v53 }
 0x213   : > { %1716 = vmatpush3.bf16.msra.mxu0 %v1960_v54 }
 0x214   : > { %1738 = vmatpush3.bf16.msra.mxu1 %v1960_v54  ;;  %1717 = vmatprep.subr.bf16.mxu0 %v1961_v55 }
 0x215   : > { %1739 = vmatprep.subr.bf16.mxu1 %v1961_v55 }
 0x217   : > { %1718 = vmatpush3.bf16.msra.mxu0 %v1962_v56 }
 0x218   : > { %1740 = vmatpush3.bf16.msra.mxu1 %v1962_v56  ;;  %1719 = vmatprep.subr.bf16.mxu0 %v1963_v57 }
 0x219   : > { %1741 = vmatprep.subr.bf16.mxu1 %v1963_v57 }
 0x21b   : > { %1720 = vmatpush3.bf16.msra.mxu0 %v1964_v58 }
 0x21c   : > { %1742 = vmatpush3.bf16.msra.mxu1 %v1964_v58  ;;  %1721 = vmatprep.subr.bf16.mxu0 %v1965_v59 }
 0x21d   : > { %1743 = vmatprep.subr.bf16.mxu1 %v1965_v59 }
 0x21f   : > { %1722 = vmatpush3.bf16.msra.mxu0 %v1966_v60 }
 0x220   : > { %1744 = vmatpush3.bf16.msra.mxu1 %v1966_v60  ;;  %1723 = vmatprep.subr.bf16.mxu0 %v1967_v61 }
 0x221   : > { %1745 = vmatprep.subr.bf16.mxu1 %v1967_v61 }
 0x223   : > { %1724 = vmatpush3.bf16.msra.mxu0 %v1968_v62 }
 0x224   : > { %1746 = vmatpush3.bf16.msra.mxu1 %v1968_v62  ;;  %1725 = vmatprep.subr.bf16.mxu0 %v1969_v63 }
 0x225   : > { %1747 = vmatprep.subr.bf16.mxu1 %v1969_v63 }
 0x227   : > { %1726 = vmatpush3.bf16.msra.mxu0 %v1970_v0 }
 0x228   : > { %1748 = vmatpush3.bf16.msra.mxu1 %v1970_v0 }
 0x2ca   : > { %v911_v8 = vpop.f32.mrf.mxu0 }
 0x2cb   : > { %v2472_v9 = vadd.f32 %v911_v8, %v790_v6  ;;  %v982_v10 = vpop.f32.mrf.mxu1 }
 0x2cc   : > { %v2474_v11 = vadd.f32 %v982_v10, %v790_v6  ;;  %v913_v12 = vpop.f32.mrf.mxu0 }
 0x2cd   : > { %v924_v13 = vmul.f32 1.442695, %v2472_v9  ;;  %v914_v14 = vadd.f32 %v913_v12, %v794_v7  ;;  %v984_v15 = vpop.f32.mrf.mxu1  ;;  %vm920_vm13 = vcmp.gt.f32.partialorder %v2472_v9, 0.0 }
 0x2ce   : > { %v995_v16 = vmul.f32 1.442695, %v2474_v11  ;;  %v985_v17 = vadd.f32 %v984_v15, %v794_v7  ;;  %v915_v18 = vpop.f32.mrf.mxu0  ;;  %vm991_vm14 = vcmp.gt.f32.partialorder %v2474_v11, 0.0 }
 0x2cf   : > { %1987 = vpow2.f32 %v924_v13  ;;  %v926_v19 = vmul.f32 1.442695, %v914_v14  ;;  %v916_v20 = vadd.f32 %v915_v18, %v790_v6  ;;  %v986_v21 = vpop.f32.mrf.mxu1  ;;  %vm921_vm15 = vcmp.gt.f32.partialorder %v914_v14, 0.0 }
 0x2d0   : > { %1989 = vpow2.f32 %v995_v16  ;;  %v997_v22 = vmul.f32 1.442695, %v985_v17  ;;  %v987_v23 = vadd.f32 %v986_v21, %v790_v6  ;;  %v917_v24 = vpop.f32.mrf.mxu0  ;;  %vm992_vm0 = vcmp.gt.f32.partialorder %v985_v17, 0.0 }
 0x2d1   : > { %1991 = vpow2.f32 %v926_v19  ;;  %v928_v25 = vmul.f32 1.442695, %v916_v20  ;;  %v918_v26 = vadd.f32 %v917_v24, %v794_v7  ;;  %v988_v27 = vpop.f32.mrf.mxu1  ;;  %vm922_vm1 = vcmp.gt.f32.partialorder %v916_v20, 0.0 }
 0x2d2   : > { %1993 = vpow2.f32 %v997_v22  ;;  %v999_v28 = vmul.f32 1.442695, %v987_v23  ;;  %v989_v29 = vadd.f32 %v988_v27, %v794_v7  ;;  %vm993_vm2 = vcmp.gt.f32.partialorder %v987_v23, 0.0 }
 0x2d3   : > { %1995 = vpow2.f32 %v928_v25  ;;  %v930_v30 = vmul.f32 1.442695, %v918_v26  ;;  %vm923_vm3 = vcmp.gt.f32.partialorder %v918_v26, 0.0 }
 0x2d4   : > { %1997 = vpow2.f32 %v999_v28  ;;  %v1001_v31 = vmul.f32 1.442695, %v989_v29  ;;  %vm994_vm4 = vcmp.gt.f32.partialorder %v989_v29, 0.0 }
 0x2d5   : > { %1999 = vpow2.f32 %v930_v30 }
 0x2d6   : > { %2001 = vpow2.f32 %v1001_v31 }
 0x2dc   : > { %v1988_v32 = vpop.eup %1987 }
 0x2dd   : > { %v1990_v33 = vpop.eup %1989  ;;  %v1643_v35 = vadd.f32 -1.0, %v1988_v32 }
 0x2de   : > { %v1992_v34 = vpop.eup %1991  ;;  %v1647_v37 = vadd.f32 -1.0, %v1990_v33 }
 0x2df   : > { %v1994_v36 = vpop.eup %1993  ;;  %v1644_v38 = vadd.f32 -1.0, %v1992_v34  ;;  %v936_v45 = vmul.f32 1.6732632, %v1643_v35 }
 0x2e0   : > { %v1996_v39 = vpop.eup %1995  ;;  %v1648_v40 = vadd.f32 -1.0, %v1994_v36  ;;  %v1007_v49 = vmul.f32 1.6732632, %v1647_v37 }
 0x2e1   : > { %v1998_v41 = vpop.eup %1997  ;;  %v937_v42 = vmul.f32 1.6732632, %v1644_v38  ;;  %v1645_v43 = vadd.f32 -1.0, %v1996_v39  ;;  %v940_v57 = vsel %vm920_vm13, %v2472_v9, %v936_v45  ;;  %v1268_v38 = vld [vmem:[%s2591_s9] sm:$0x3] }
 0x2e2   : > { %v2000_v44 = vpop.eup %1999  ;;  %v1008_v46 = vmul.f32 1.6732632, %v1648_v40  ;;  %v1649_v47 = vadd.f32 -1.0, %v1998_v41  ;;  %v1011_v61 = vsel %vm991_vm14, %v2474_v11, %v1007_v49  ;;  %v944_v7 = vmul.f32 1.050701, %v940_v57 }
 0x2e3   : > { %v2002_v48 = vpop.eup %2001  ;;  %v938_v50 = vmul.f32 1.6732632, %v1645_v43  ;;  %v1646_v51 = vadd.f32 -1.0, %v2000_v44  ;;  %v941_v54 = vsel %vm921_vm15, %v914_v14, %v937_v42  ;;  %v1015_v12 = vmul.f32 1.050701, %v1011_v61 }
 0x2e4   : > { %v1009_v52 = vmul.f32 1.6732632, %v1649_v47  ;;  %v1650_v53 = vadd.f32 -1.0, %v2002_v48  ;;  %v1012_v58 = vsel %vm992_vm0, %v985_v17, %v1008_v46  ;;  %v945_v0 = vmul.f32 1.050701, %v941_v54 }
 0x2e5   : > { %v942_v55 = vsel %vm922_vm1, %v916_v20, %v938_v50  ;;  %v939_v56 = vmul.f32 1.6732632, %v1646_v51  ;;  %v1016_v8 = vmul.f32 1.050701, %v1012_v58  ;;  %v1651_v17 = vld [vmem:[%s2590_s8] ss:$0 sm:$0xff]  ;;  %v1273_v44 = vrot.slane %v1268_v38, %v789_v3 }
 0x2e6   : > { %v1013_v59 = vsel %vm993_vm2, %v987_v23, %v1009_v52  ;;  %v1010_v60 = vmul.f32 1.6732632, %v1650_v53  ;;  %v946_v62 = vmul.f32 1.050701, %v942_v55  ;;  %v1296_v51 = vrot.slane %v1268_v38, %v793_v5 }
 0x2e7   : > { %v943_v63 = vsel %vm923_vm3, %v918_v26, %v939_v56  ;;  %v1017_v1 = vmul.f32 1.050701, %v1013_v59 }
 0x2e8   : > { %v947_v4 = vmul.f32 1.050701, %v943_v63  ;;  %v1014_v6 = vsel %vm994_vm4, %v989_v29, %v1010_v60  ;;  %v1019_v9 = vpack.c.bf16 %v946_v62, %v944_v7 }
 0x2e9   : > { %v1018_v10 = vmul.f32 1.050701, %v1014_v6  ;;  %v1021_v15 = vpack.c.bf16 %v1017_v1, %v1015_v12 }
 0x2ea   : > { %v1020_v13 = vpack.c.bf16 %v947_v4, %v945_v0 }
 0x2eb   : > { %v1022_v14 = vpack.c.bf16 %v1018_v10, %v1016_v8 }
 0x2ec   : > { %1190 = vmatprep.mubr.bf16.mxu0 %v1020_v13  ;;  %v1672_v13 = vld [vmem:[%s2592_s10] ss:$0 sm:$0xff] }
 0x2ed   : > { %1245 = vmatprep.mubr.bf16.mxu1 %v1022_v14  ;;  %1191 = vmatmul.mubr.bf16.vlgmr.msra.gmra.mxu0 %v1019_v9 }
 0x2ee   : > { %1246 = vmatmul.mubr.bf16.vlgmr.msra.gmra.mxu1 %v1021_v15 }
 0x3ad   : > { %v1727_v11 = vpop.f32.mrf.mxu0 }
 0x3ae   : > { %v1749_v16 = vpop.f32.mrf.mxu1 }
 0x3af   : > { %v1728_v18 = vpop.f32.mrf.mxu0 }
 0x3b0   : > { %v1729_v19 = vadd.f32 %v1728_v18, %v1727_v11  ;;  %v1750_v20 = vpop.f32.mrf.mxu1 }
 0x3b1   : > { %v1751_v21 = vadd.f32 %v1750_v20, %v1749_v16  ;;  %v1730_v22 = vpop.f32.mrf.mxu0 }
 0x3b2   : > { %v1193_v23 = vadd.f32 %v1729_v19, %v1651_v17  ;;  %v1752_v24 = vpop.f32.mrf.mxu1 }
 0x3b3   : > { %v1248_v25 = vadd.f32 %v1751_v21, %v1651_v17  ;;  %v1731_v26 = vpop.f32.mrf.mxu0 }
 0x3b4   : > { %v1201_v27 = vmul.f32 1.442695, %v1193_v23  ;;  %v1732_v28 = vadd.f32 %v1731_v26, %v1730_v22  ;;  %v1753_v29 = vpop.f32.mrf.mxu1  ;;  %vm1199_vm5 = vcmp.gt.f32.partialorder %v1193_v23, 0.0 }
 0x3b5   : > { %v1256_v30 = vmul.f32 1.442695, %v1248_v25  ;;  %v1754_v31 = vadd.f32 %v1753_v29, %v1752_v24  ;;  %vm1254_vm6 = vcmp.gt.f32.partialorder %v1248_v25, 0.0 }
 0x3b6   : > { %2003 = vpow2.f32 %v1201_v27  ;;  %v1196_v32 = vadd.f32 %v1732_v28, %v1651_v17 }
 0x3b7   : > { %2005 = vpow2.f32 %v1256_v30  ;;  %v1251_v33 = vadd.f32 %v1754_v31, %v1651_v17 }
 0x3b8   : > { %v1203_v34 = vmul.f32 1.442695, %v1196_v32  ;;  %vm1200_vm7 = vcmp.gt.f32.partialorder %v1196_v32, 0.0 }
 0x3b9   : > { %v1258_v35 = vmul.f32 1.442695, %v1251_v33  ;;  %vm1255_vm9 = vcmp.gt.f32.partialorder %v1251_v33, 0.0 }
 0x3ba   : > { %2007 = vpow2.f32 %v1203_v34 }
 0x3bb   : > { %2009 = vpow2.f32 %v1258_v35 }
 0x3c3   : > { %v2004_v36 = vpop.eup %2003 }
 0x3c4   : > { %v2006_v37 = vpop.eup %2005  ;;  %v1668_v39 = vadd.f32 -1.0, %v2004_v36 }
 0x3c5   : > { %v1670_v40 = vadd.f32 -1.0, %v2006_v37 }
 0x3c6   : > { %v1207_v41 = vmul.f32 1.6732632, %v1668_v39 }
 0x3c7   : > { %v2008_v42 = vpop.eup %2007  ;;  %v1262_v43 = vmul.f32 1.6732632, %v1670_v40 }
 0x3c8   : > { %v2010_v45 = vpop.eup %2009  ;;  %v1209_v46 = vsel %vm1199_vm5, %v1193_v23, %v1207_v41  ;;  %v1669_v47 = vadd.f32 -1.0, %v2008_v42 }
 0x3c9   : > { %v1264_v48 = vsel %vm1254_vm6, %v1248_v25, %v1262_v43  ;;  %v1211_v49 = vmul.f32 1.050701, %v1209_v46  ;;  %v1671_v50 = vadd.f32 -1.0, %v2010_v45 }
 0x3ca   : > { %v1266_v52 = vmul.f32 1.050701, %v1264_v48  ;;  %v1208_v53 = vmul.f32 1.6732632, %v1669_v47 }
 0x3cb   : > { %v1274_v54 = vmul.f32 %v1273_v44, %v1211_v49  ;;  %v1263_v55 = vmul.f32 1.6732632, %v1671_v50  ;;  %v1297_v59 = vmul.f32 %v1296_v51, %v1211_v49 }
 0x3cc   : > { %v1310_v56 = vmul.f32 %v1273_v44, %v1266_v52  ;;  %v1210_v57 = vsel %vm1200_vm7, %v1196_v32, %v1208_v53  ;;  %v1322_v6 = vmul.f32 %v1296_v51, %v1266_v52 }
 0x3cd   : > { %v1276_v3 = vsel %vm650_vm8, %v1274_v54, 0.0  ;;  %v1265_v58 = vsel %vm1255_vm9, %v1251_v33, %v1263_v55  ;;  %v1212_v60 = vmul.f32 1.050701, %v1210_v57  ;;  %v1299_v5 = vsel %vm650_vm8, %v1297_v59, 0.0 }
 0x3ce   : > { %v1312_v61 = vsel %vm650_vm8, %v1310_v56, 0.0  ;;  %1277 = vadd.xlane.f32.xlu0 %v1276_v3  ;;  %v1267_v62 = vmul.f32 1.050701, %v1265_v58  ;;  %v1324_v10 = vsel %vm650_vm8, %v1322_v6, 0.0 }
 0x3cf   : > { %1313 = vadd.xlane.f32.xlu1 %v1312_v61  ;;  %v1275_v63 = vmul.f32 %v1273_v44, %v1212_v60  ;;  %v1298_v1 = vmul.f32 %v1296_v51, %v1212_v60 }
 0x3d0   : > { %v1311_v2 = vmul.f32 %v1273_v44, %v1267_v62  ;;  %v1323_v8 = vmul.f32 %v1296_v51, %v1267_v62 }
 0x3d1   : > { %v1279_v4 = vsel %vm650_vm8, %v1275_v63, 0.0  ;;  %v1302_v7 = vsel %vm650_vm8, %v1298_v1, 0.0 }
 0x3d2   : > { %v1315_v0 = vsel %vm650_vm8, %v1311_v2, 0.0  ;;  %1300 = vadd.xlane.f32.xlu0 %v1299_v5  ;;  %v1327_v12 = vsel %vm650_vm8, %v1323_v8, 0.0  ;;  %vm1307_vm8 = vcmask 15368  }
 0x3d3   : > { %1316 = vadd.xlane.f32.xlu1 %v1315_v0 }
 0x3d6   : > { %1280 = vadd.xlane.f32.xlu0 %v1279_v4 }
 0x3d7   : > { %1303 = vadd.xlane.f32.xlu1 %v1302_v7 }
 0x3da   : > { %1325 = vadd.xlane.f32.xlu0 %v1324_v10 }
 0x3db   : > { %1328 = vadd.xlane.f32.xlu1 %v1327_v12 }
 0x457   : > { %v1278_v9 = vpop.xlane.xlu0 %1277 }
 0x458   : > { %v1314_v14 = vpop.xlane.xlu1 %1313  ;;  %v1288_v15 = vadd.f32 %v1672_v13, %v1278_v9 }
 0x459   : > { %v1318_v11 = vadd.f32 %v1672_v13, %v1314_v14 }
 0x45a   : > { %1291 = vst.msk [vmem:[%s2508_s23] sm:$0xff] %vm1290_vm10, %v1288_v15 }
 0x45b   : > { %1320 = vst.msk [vmem:[%s2508_s23 + $0x10] sm:$0xff] %vm1290_vm10, %v1318_v11  ;;  %v1301_v16 = vpop.xlane.xlu0 %1300 }
 0x45c   : > { %v1317_v17 = vpop.xlane.xlu1 %1316  ;;  %v1305_v18 = vadd.f32 %v1672_v13, %v1301_v16 }
 0x45d   : > { %v1319_v19 = vadd.f32 %v1672_v13, %v1317_v17 }
 0x45e   : > { %1308 = vst.msk [vmem:[%s2508_s23] sm:$0xff] %vm1307_vm8, %v1305_v18 }
 0x45f   : > { %1321 = vst.msk [vmem:[%s2508_s23 + $0x18] sm:$0xff] %vm1290_vm10, %v1319_v19  ;;  %v1281_v20 = vpop.xlane.xlu0 %1280 }
 0x460   : > { %v1304_v21 = vpop.xlane.xlu1 %1303  ;;  %v1289_v22 = vadd.f32 %v1672_v13, %v1281_v20 }
 0x461   : > { %v1306_v23 = vadd.f32 %v1672_v13, %v1304_v21 }
 0x462   : > { %1292 = vst.msk [vmem:[%s2508_s23 + $0x8] sm:$0xff] %vm1290_vm10, %v1289_v22 }
 0x463   : > { %1309 = vst.msk [vmem:[%s2508_s23 + $0x8] sm:$0xff] %vm1307_vm8, %v1306_v23  ;;  %v1326_v24 = vpop.xlane.xlu0 %1325  ;;  %1340 = sbr.rel (!%p2279_p4) target bundleno = 1167 (0x48f), region = 80 }
 0x464   : > { %v1329_v25 = vpop.xlane.xlu1 %1328  ;;  %v1330_v26 = vadd.f32 %v1672_v13, %v1326_v24 }
 0x465   : > { %v1331_v27 = vadd.f32 %v1672_v13, %v1329_v25 }
 0x466   : > { %1332 = vst.msk [vmem:[%s2508_s23 + $0x10] sm:$0xff] %vm1307_vm8, %v1330_v26 }
 0x467   : > { %1333 = vst.msk [vmem:[%s2508_s23 + $0x18] sm:$0xff] %vm1307_vm8, %v1331_v27 }
 0x468   : > { %s2604_s17 = smov (!%p1343_p6, %s1342_s17), 4 }
 0x469   : > { %s1675_s15 = sshll.u32 %s2604_s17, 7 }
 0x46a   : > { %p1678_p9 = scmp.eq.s32.totalorder %s1675_s15, 0 }
 0x46b   : > { %s2539_s16 = sshrl.u32 (!%p1678_p9), %s2604_s17, 2 }
 0x46c   : > { %1351 = sbr.rel (%p1678_p9) target bundleno = 1167 (0x48f), region = 84  ;;  %p1679_p4 = scmp.le.s32.totalorder (!%p1678_p9), %s2539_s16, 0 }
 0x471   : > { %1522 = sbr.rel (%p1679_p4) target bundleno = 1150 (0x47e), region = 161  ;;  %s2597_s20 = smov (!%p1679_p4), %s2533_s28 }
 0x472   : > { %s2598_s25 = smov (!%p1679_p4), %s2508_s23  ;;  %s2548_s30 = smov (!%p1679_p4), 0  }
 0x473   : > { %s2165_s19 = smov (!%p1679_p4), 0  }
 0x476 LB: >> { %v1420_v28 = vld [vmem:[%s2159_s25] sm:$0xff]  ;;  %v1422_v29 = vld [vmem:[%s2159_s25 + $0x8] sm:$0xff]  ;;  %v1424_v30 = vld [vmem:[%s2159_s25 + $0x10] sm:$0xff]  ;;  %s1428_s22 = sadd.s32 1, %s2163_s30  ;;  %s1414_s19 = sadd.s32 1, %s2167_s19   ;;  %s2167_s19 = sphi %s2165_s19, %s1414_s19   ;;  %s2163_s30 = sphi %s2548_s30, %s2599_s30   ;;  %s2159_s25 = sphi %s2598_s25, %s1433_s25   ;;  %s2155_s20 = sphi %s2597_s20, %s1434_s20  }
 0x477   : >> { %1421 = vst [vmem:[%s2155_s20] sm:$0xff] %v1420_v28  ;;  %1423 = vst [vmem:[%s2155_s20 + $0x8] sm:$0xff] %v1422_v29  ;;  %v1426_v31 = vld [vmem:[%s2159_s25 + $0x18] sm:$0xff]  ;;  %p1429_p10 = scmp.ge.s32.totalorder %s1428_s22, %s2539_s16  ;;  %p1413_p0 = scmp.ge.s32.totalorder %s1414_s19, %s2539_s16 }
 0x478   : >> { %1425 = vst [vmem:[%s2155_s20 + $0x10] sm:$0xff] %v1424_v30  ;;  %1427 = vst [vmem:[%s2155_s20 + $0x18] sm:$0xff] %v1426_v31 }
 0x479   : >> { %s2606_s22 = smov (%p1429_p10, %s1428_s22), 0  ;;  %1416 = sbr.rel (!%p1413_p0) target bundleno = 1142 (0x476), region = 167 }
 0x47a   : >> { %s1680_s26 = sshll.u32 %s2606_s22, 5  ;;  %s2599_s30 = smov %s2606_s22 }
 0x47b   : >> { %s1433_s25 = scalar_lea.vmem %s2508_s23, %s1680_s26 [#allocation7]   ;;  %s1434_s20 = scalar_lea.vmem %s2533_s28, %s1680_s26  }
 0x47e PF: > { %s2564_s12 = sand.u32 3, %s2604_s17   ;;  %s1691_s14 = sshll.u32 %s2539_s16, 5 }
 0x47f   : > { %s1439_s27 = scalar_lea.vmem %s2508_s23, %s1691_s14 [#allocation7]   ;;  %s1441_s29 = scalar_lea.vmem %s2533_s28, %s1691_s14  }
 0x480   : > { %p1685_p1 = scmp.le.s32.totalorder %s2564_s12, 0 }
 0x481   : > { %s2169_s13 = smov (!%p1685_p1), %s1441_s29   ;;  %s2173_s15 = smov (!%p1685_p1), %s1439_s27  }
 0x482   : > { %1536 = sbr.rel (%p1685_p1) target bundleno = 1167 (0x48f), region = 172  ;;  %s2177_s30 = smov (!%p1685_p1), 0  }
 0x483   : > { %s2181_s26 = smov (!%p1685_p1), 0  }
 0x487 LB: >> { %v1451_v32 = vld [vmem:[%s2175_s15] sm:$0xff]  ;;  %s1453_s17 = sadd.s32 1, %s2179_s30  ;;  %s1445_s26 = sadd.s32 1, %s2183_s26   ;;  %s2183_s26 = sphi %s2181_s26, %s1445_s26   ;;  %s2179_s30 = sphi %s2177_s30, %s2178_s30   ;;  %s2175_s15 = sphi %s2173_s15, %s1458_s15   ;;  %s2171_s13 = sphi %s2169_s13, %s1459_s13  }
 0x488   : >> { %1452 = vst [vmem:[%s2171_s13] sm:$0xff] %v1451_v32  ;;  %p1454_p2 = scmp.ge.s32.totalorder %s1453_s17, %s2564_s12  ;;  %p1444_p3 = scmp.ge.s32.totalorder %s1445_s26, %s2564_s12 }
 0x48a   : >> { %s2608_s17 = smov (%p1454_p2, %s1453_s17), 0  ;;  %1447 = sbr.rel (!%p1444_p3) target bundleno = 1159 (0x487), region = 178 }
 0x48b   : >> { %s1686_s23 = sshll.u32 %s2608_s17, 3  ;;  %s2178_s30 = smov %s2608_s17  }
 0x48c   : >> { %s1458_s15 = scalar_lea.vmem %s1439_s27, %s1686_s23 [#allocation7]   ;;  %s1459_s13 = scalar_lea.vmem %s1441_s29, %s1686_s23  }
 0x48f PF: > { %p20_p5 = scmp.ge.s32.totalorder %s2269_s21, 4   ;;  %s2600_s17 = smov %s2147_s18 }
 0x490   : > { %s2601_s18 = smov %s2277_s24  ;;  %s2602_s19 = smov %s2269_s21 }
 0x491   :  { %22 = sbr.rel (!%p20_p5) target bundleno = 3 (0x3), region = 189 }
 0x496   :  { %1475 = vsyncpa [#allocation3], 1 }
 0x497   :  { %1477 = vsyncpa [#allocation3 + $0x1], 1 }
 0x498   :  { %1478 = vsyncpa [#allocation5], 1 }

</bundles_post_ra>
